<compile_context>
chip_gen: v5e
topology: v5e:2x2
jax: 0.10.0
libtpu: 0.0.40
codegen_flags: <defaults>
</compile_context>

<pallas_src>
import functools

import jax
import jax.numpy as jnp
from jax.experimental import pallas as pl
from jax.experimental.pallas import tpu as pltpu


def _msa_kernel(x_ref, wq_ref, wk_ref, wv_ref, wo_ref, b_ref, out_ref, *,
                num_heads, head_dim):
    # x_ref:  (Bb, N, C)   block of batch elements
    # wq/wk/wv_ref: (C, C) bf16, head-major columns (natural PyTorch layout), scale folded
    #               into wq at prep time
    # wo_ref: (C, C)  bf16  == proj.weight.T
    # b_ref:  (1, C)  f32   == proj.bias
    Bb, N, C = x_ref.shape
    H, D = num_heads, head_dim
    bf16 = jnp.bfloat16
    f32 = jnp.float32
    nobatch2d = (((1,), (0,)), ((), ()))           # plain 2-D matmul dims

    # ---- fused QKV projections: three MXU-filling 2-D matmuls, M = Bb*N, K = C ---------
    xf = x_ref[...].reshape(Bb * N, C).astype(bf16)            # leading-dim merge only
    q = jax.lax.dot_general(xf, wq_ref[...], nobatch2d, preferred_element_type=f32)
    k = jax.lax.dot_general(xf, wk_ref[...], nobatch2d, preferred_element_type=f32)
    v = jax.lax.dot_general(xf, wv_ref[...], nobatch2d, preferred_element_type=f32)
    q3 = q.reshape(Bb, N, C)
    k3 = k.reshape(Bb, N, C)
    v3 = v.reshape(Bb, N, C)

    # ---- per-head attention (static unroll over H; contraction over D is inherent) ------
    # Softmax vector math stays in f32; only MXU operands are bf16.  Normalization is
    # deferred to the (Bb,N,D) PV output instead of the (Bb,N,N) probabilities.
    o_heads = []
    for h in range(H):
        sl = slice(h * D, (h + 1) * D)
        qh = q3[:, :, sl].astype(bf16)                          # (Bb, N, D)
        kh = k3[:, :, sl].astype(bf16)
        vh = v3[:, :, sl].astype(bf16)
        s = jax.lax.dot_general(                                # (Bb, N, N) f32
            qh, kh, dimension_numbers=(((2,), (2,)), ((0,), (0,))),
            preferred_element_type=f32)
        s = s - jnp.max(s, axis=-1, keepdims=True)
        p = jnp.exp(s)
        denom = jnp.sum(p, axis=-1, keepdims=True)              # (Bb, N, 1)
        o = jax.lax.dot_general(                                # (Bb, N, D) f32
            p.astype(bf16), vh, dimension_numbers=(((2,), (1,)), ((0,), (0,))),
            preferred_element_type=f32)
        # deferred softmax normalization on N*D elements (EUP reciprocal, not a VALU divide)
        o_heads.append(o * pl.reciprocal(denom, approx=True))

    # ---- output projection: concat heads -> one (Bb*N, C) @ (C, C) matmul (K = C) -------
    o_cat = jnp.concatenate(o_heads, axis=-1)                   # (Bb, N, C), head-major
    of = o_cat.reshape(Bb * N, C).astype(bf16)
    y = jax.lax.dot_general(of, wo_ref[...], nobatch2d, preferred_element_type=f32)
    y = y + b_ref[...]                                          # (1, C) broadcast
    out_ref[...] = y.reshape(Bb, N, C).astype(out_ref.dtype)


def prepare_msa_params(wqkv_t, wproj_t, bproj, *, num_heads):
    """One-time (parameter-load-time) weight prep -- hoisted out of the forward call.

    wqkv_t : (C, 3C) == qkv.weight.T   (qkv_bias=False)
    wproj_t: (C, C)  == proj.weight.T
    bproj  : (C,) or (1, C) == proj.bias

    Splits the fused QKV weight into wq/wk/wv (so the kernel never slices the 3C axis),
    folds the softmax scale into wq, and pre-casts the matmul weights to bfloat16.
    """
    C = wqkv_t.shape[0]
    D = C // num_heads
    scale = D ** (-0.5)
    wq = (wqkv_t[:, 0 * C:1 * C] * scale).astype(jnp.bfloat16)   # scale folded into Wq
    wk = wqkv_t[:, 1 * C:2 * C].astype(jnp.bfloat16)
    wv = wqkv_t[:, 2 * C:3 * C].astype(jnp.bfloat16)
    wo = wproj_t.astype(jnp.bfloat16)
    b = bproj.reshape(1, C).astype(jnp.float32)                  # bias added in f32
    return wq, wk, wv, wo, b


def _pick_block_b(B, N):
    """Batch-block heuristic: keep the grid >= 2 steps (dual-TensorCore v7x), then make the
    flattened matmul M = block_b*N >= 256 (v6e/v7x MXU width) when the batch allows it."""
    if N % 8 != 0:
        # The in-kernel (Bb, N) -> (Bb*N,) merge is only layout-clean when N is a multiple
        # of 8 sublanes; production callers should pad N (see TODO at top).
        return 1
    divisors = [d for d in range(1, B + 1) if B % d == 0]
    parallel = [d for d in divisors if B // d >= 2]
    cands = parallel if parallel else divisors
    big_enough = [d for d in cands if d * N >= 256]
    return min(big_enough) if big_enough else max(cands)


def multi_scale_attention(x, thw_shape, params, *, num_heads, block_b=None):
    """Pallas implementation of MultiScaleAttention.forward (default config).

    `params` comes from prepare_msa_params (cached at parameter-load time).
    Returns (out, out_shape); out_shape == thw_shape because pool_q is None by default.
    """
    wq, wk, wv, wo, b = params
    B, N, C = x.shape
    D = C // num_heads

    if block_b is None:
        block_b = _pick_block_b(B, N)

    kern = functools.partial(_msa_kernel, num_heads=num_heads, head_dim=D)

    out = pl.pallas_call(
        kern,
        out_shape=jax.ShapeDtypeStruct((B, N, C), x.dtype),
        grid_spec=pltpu.PrefetchScalarGridSpec(
            num_scalar_prefetch=0,
            grid=(B // block_b,),
            in_specs=[
                pl.BlockSpec((block_b, N, C), lambda i: (i, 0, 0)),  # x block
                pl.BlockSpec((C, C), lambda i: (0, 0)),              # Wq (scaled, bf16)
                pl.BlockSpec((C, C), lambda i: (0, 0)),              # Wk (bf16)
                pl.BlockSpec((C, C), lambda i: (0, 0)),              # Wv (bf16)
                pl.BlockSpec((C, C), lambda i: (0, 0)),              # Wproj^T (bf16)
                pl.BlockSpec((1, C), lambda i: (0, 0)),              # proj bias (f32)
            ],
            out_specs=pl.BlockSpec((block_b, N, C), lambda i: (i, 0, 0)),
        ),
        compiler_params=pltpu.CompilerParams(
            dimension_semantics=("parallel",),
            # Toy shapes are tiny; at production shapes re-budget per generation
            # (v7x ~48-56 MiB max, v5e/v6e can go higher).
            vmem_limit_bytes=32 * 1024 * 1024),
    )(x, wq, wk, wv, wo, b)

    return out, list(thw_shape)


def _reference(x, wqkv_t, wproj_t, bproj, num_heads):
    """Pure-JAX reference mirroring the PyTorch forward exactly (f32, highest precision)."""
    B, N, C = x.shape
    D = C // num_heads
    scale = D ** (-0.5)
    qkv = jnp.einsum('bnc,cd->bnd', x, wqkv_t, precision='highest')
    qkv = qkv.reshape(B, N, 3, num_heads, D).transpose(2, 0, 3, 1, 4)
    q, k, v = qkv[0], qkv[1], qkv[2]                                  # (B, H, N, D)
    attn = jnp.einsum('bhnd,bhmd->bhnm', q, k, precision='highest') * scale
    attn = jax.nn.softmax(attn, axis=-1)
    o = jnp.einsum('bhnm,bhmd->bhnd', attn, v, precision='highest')
    o = o.transpose(0, 2, 1, 3).reshape(B, N, C)
    return jnp.einsum('bnc,cd->bnd', o, wproj_t, precision='highest') + bproj[0]


if __name__ == "__main__":
    # Small shapes consistent with the module: dim=32, num_heads=4, head_dim=8,
    # thw_shape=[2,4,4] -> N = 2*4*4 + 1 (cls token, has_cls_embed=True) = 33.
    B = 2
    num_heads = 4
    head_dim = 8
    dim = num_heads * head_dim
    thw_shape = [2, 4, 4]
    N = thw_shape[0] * thw_shape[1] * thw_shape[2] + 1

    key = jax.random.PRNGKey(0)
    kx, kq, kp, kb = jax.random.split(key, 4)
    x = jax.random.normal(kx, (B, N, dim), dtype=jnp.float32)
    # Synthetic parameters (shapes from nn.Linear in __init__):
    #   qkv:  weight (3*dim, dim), no bias -> pass transposed (dim, 3*dim)
    #   proj: weight (dim, dim), bias (dim,) -> pass transposed + (1, dim) bias
    wqkv_t = jax.random.normal(kq, (dim, 3 * dim), dtype=jnp.float32) * 0.02
    wproj_t = jax.random.normal(kp, (dim, dim), dtype=jnp.float32) * 0.02
    bproj = jax.random.normal(kb, (1, dim), dtype=jnp.float32) * 0.02

    # One-time parameter prep (done at load time in a real model, not per forward call).
    params = prepare_msa_params(wqkv_t, wproj_t, bproj, num_heads=num_heads)

    out, out_shape = multi_scale_attention(
        x, thw_shape, params, num_heads=num_heads)
    jax.block_until_ready(out)

    ref = _reference(x, wqkv_t, wproj_t, bproj, num_heads)
    assert out.shape == (B, N, dim), out.shape
    assert out_shape == thw_shape, out_shape
    # NOTE: pl.reciprocal(approx=True) and bf16 MXU operands (f32 accumulate) are intentional
    # deviations from the f32 PyTorch math; they stay well inside these tolerances.
    assert jnp.allclose(out, ref, rtol=2e-2, atol=2e-3), \
        float(jnp.max(jnp.abs(out - ref)))
    print("KERNEL_OK")
</pallas_src>

<mosaic_0001>
module attributes {stable_mosaic.version = 11 : i64} {
  func.func @_msa_kernel(%arg0: i32, %arg1: memref<1x33x32xf32, #tpu.memory_space<vmem>>, %arg2: memref<32x32xbf16, #tpu.memory_space<vmem>>, %arg3: memref<32x32xbf16, #tpu.memory_space<vmem>>, %arg4: memref<32x32xbf16, #tpu.memory_space<vmem>>, %arg5: memref<32x32xbf16, #tpu.memory_space<vmem>>, %arg6: memref<1x32xf32, #tpu.memory_space<vmem>>, %arg7: memref<1x33x32xf32, #tpu.memory_space<vmem>>) attributes {dimension_semantics = [#tpu.dimension_semantics<parallel>], iteration_bounds = array<i64: 2>, scalar_prefetch = 0 : i64, scratch_operands = 0 : i64, tpu.core_type = #tpu.core_type<tc>, window_params = [{transform_indices = @transform_0, window_bounds = array<i64: 1, 33, 32>}, {pipeline_mode = #tpu.pipeline_mode<synchronous>, transform_indices = @transform_1, window_bounds = array<i64: 32, 32>}, {pipeline_mode = #tpu.pipeline_mode<synchronous>, transform_indices = @transform_2, window_bounds = array<i64: 32, 32>}, {pipeline_mode = #tpu.pipeline_mode<synchronous>, transform_indices = @transform_3, window_bounds = array<i64: 32, 32>}, {pipeline_mode = #tpu.pipeline_mode<synchronous>, transform_indices = @transform_4, window_bounds = array<i64: 32, 32>}, {pipeline_mode = #tpu.pipeline_mode<synchronous>, transform_indices = @transform_5, window_bounds = array<i64: 1, 32>}, {transform_indices = @transform_6, window_bounds = array<i64: 1, 33, 32>}]} {
    %c0 = arith.constant 0 : index
    %c0_0 = arith.constant 0 : index
    %c0_1 = arith.constant 0 : index
    %0 = vector.load %arg1[%c0, %c0_0, %c0_1] : memref<1x33x32xf32, #tpu.memory_space<vmem>>, vector<1x33x32xf32>
    %1 = vector.shape_cast %0 : vector<1x33x32xf32> to vector<33x32xf32>
    %2 = arith.truncf %1 : vector<33x32xf32> to vector<33x32xbf16>
    %c0_2 = arith.constant 0 : index
    %c0_3 = arith.constant 0 : index
    %3 = vector.load %arg2[%c0_2, %c0_3] : memref<32x32xbf16, #tpu.memory_space<vmem>>, vector<32x32xbf16>
    %cst = arith.constant dense<0.000000e+00> : vector<33x32xf32>
    %4 = tpu.matmul %2, %3, %cst {dimension_numbers = #tpu.dot_dimension_numbers<[1], [0], [0], [1], [0, 0, 1, 1], [], []>} : vector<33x32xbf16>, vector<32x32xbf16>, vector<33x32xf32> -> vector<33x32xf32>
    %c0_4 = arith.constant 0 : index
    %c0_5 = arith.constant 0 : index
    %5 = vector.load %arg3[%c0_4, %c0_5] : memref<32x32xbf16, #tpu.memory_space<vmem>>, vector<32x32xbf16>
    %cst_6 = arith.constant dense<0.000000e+00> : vector<33x32xf32>
    %6 = tpu.matmul %2, %5, %cst_6 {dimension_numbers = #tpu.dot_dimension_numbers<[1], [0], [0], [1], [0, 0, 1, 1], [], []>} : vector<33x32xbf16>, vector<32x32xbf16>, vector<33x32xf32> -> vector<33x32xf32>
    %c0_7 = arith.constant 0 : index
    %c0_8 = arith.constant 0 : index
    %7 = vector.load %arg4[%c0_7, %c0_8] : memref<32x32xbf16, #tpu.memory_space<vmem>>, vector<32x32xbf16>
    %cst_9 = arith.constant dense<0.000000e+00> : vector<33x32xf32>
    %8 = tpu.matmul %2, %7, %cst_9 {dimension_numbers = #tpu.dot_dimension_numbers<[1], [0], [0], [1], [0, 0, 1, 1], [], []>} : vector<33x32xbf16>, vector<32x32xbf16>, vector<33x32xf32> -> vector<33x32xf32>
    %9 = vector.shape_cast %4 : vector<33x32xf32> to vector<1x33x32xf32>
    %10 = vector.shape_cast %6 : vector<33x32xf32> to vector<1x33x32xf32>
    %11 = vector.shape_cast %8 : vector<33x32xf32> to vector<1x33x32xf32>
    %12 = vector.extract_strided_slice %9 {offsets = [0, 0, 0], sizes = [1, 33, 8], strides = [1, 1, 1]} : vector<1x33x32xf32> to vector<1x33x8xf32>
    %13 = arith.truncf %12 : vector<1x33x8xf32> to vector<1x33x8xbf16>
    %14 = vector.extract_strided_slice %10 {offsets = [0, 0, 0], sizes = [1, 33, 8], strides = [1, 1, 1]} : vector<1x33x32xf32> to vector<1x33x8xf32>
    %15 = arith.truncf %14 : vector<1x33x8xf32> to vector<1x33x8xbf16>
    %16 = vector.extract_strided_slice %11 {offsets = [0, 0, 0], sizes = [1, 33, 8], strides = [1, 1, 1]} : vector<1x33x32xf32> to vector<1x33x8xf32>
    %17 = arith.truncf %16 : vector<1x33x8xf32> to vector<1x33x8xbf16>
    %cst_10 = arith.constant dense<0.000000e+00> : vector<1x33x33xf32>
    %18 = tpu.matmul %13, %15, %cst_10 {dimension_numbers = #tpu.dot_dimension_numbers<[2], [2], [1], [1], [0, 0, 0, 1, 1, 1], [0], [0]>} : vector<1x33x8xbf16>, vector<1x33x8xbf16>, vector<1x33x33xf32> -> vector<1x33x33xf32>
    %cst_11 = arith.constant dense<0xFF800000> : vector<1x33xf32>
    %19 = vector.multi_reduction <maximumf>, %18, %cst_11 [2] : vector<1x33x33xf32> to vector<1x33xf32>
    %20 = vector.shape_cast %19 : vector<1x33xf32> to vector<1x33x1xf32>
    %21 = vector.broadcast %20 : vector<1x33x1xf32> to vector<1x33x33xf32>
    %22 = arith.subf %18, %21 : vector<1x33x33xf32>
    %23 = math.exp %22 : vector<1x33x33xf32>
    %cst_12 = arith.constant dense<0.000000e+00> : vector<1x33xf32>
    %24 = vector.multi_reduction <add>, %23, %cst_12 [2] : vector<1x33x33xf32> to vector<1x33xf32>
    %25 = vector.shape_cast %24 : vector<1x33xf32> to vector<1x33x1xf32>
    %26 = arith.truncf %23 : vector<1x33x33xf32> to vector<1x33x33xbf16>
    %cst_13 = arith.constant dense<0.000000e+00> : vector<1x33x8xf32>
    %27 = tpu.matmul %26, %17, %cst_13 {dimension_numbers = #tpu.dot_dimension_numbers<[2], [1], [1], [2], [0, 0, 0, 1, 1, 2], [0], [0]>} : vector<1x33x33xbf16>, vector<1x33x8xbf16>, vector<1x33x8xf32> -> vector<1x33x8xf32>
    %28 = tpu.reciprocal %25 {approx = true} : vector<1x33x1xf32> -> vector<1x33x1xf32>
    %29 = vector.broadcast %28 : vector<1x33x1xf32> to vector<1x33x8xf32>
    %30 = arith.mulf %27, %29 : vector<1x33x8xf32>
    %31 = vector.extract_strided_slice %9 {offsets = [0, 0, 8], sizes = [1, 33, 8], strides = [1, 1, 1]} : vector<1x33x32xf32> to vector<1x33x8xf32>
    %32 = arith.truncf %31 : vector<1x33x8xf32> to vector<1x33x8xbf16>
    %33 = vector.extract_strided_slice %10 {offsets = [0, 0, 8], sizes = [1, 33, 8], strides = [1, 1, 1]} : vector<1x33x32xf32> to vector<1x33x8xf32>
    %34 = arith.truncf %33 : vector<1x33x8xf32> to vector<1x33x8xbf16>
    %35 = vector.extract_strided_slice %11 {offsets = [0, 0, 8], sizes = [1, 33, 8], strides = [1, 1, 1]} : vector<1x33x32xf32> to vector<1x33x8xf32>
    %36 = arith.truncf %35 : vector<1x33x8xf32> to vector<1x33x8xbf16>
    %cst_14 = arith.constant dense<0.000000e+00> : vector<1x33x33xf32>
    %37 = tpu.matmul %32, %34, %cst_14 {dimension_numbers = #tpu.dot_dimension_numbers<[2], [2], [1], [1], [0, 0, 0, 1, 1, 1], [0], [0]>} : vector<1x33x8xbf16>, vector<1x33x8xbf16>, vector<1x33x33xf32> -> vector<1x33x33xf32>
    %cst_15 = arith.constant dense<0xFF800000> : vector<1x33xf32>
    %38 = vector.multi_reduction <maximumf>, %37, %cst_15 [2] : vector<1x33x33xf32> to vector<1x33xf32>
    %39 = vector.shape_cast %38 : vector<1x33xf32> to vector<1x33x1xf32>
    %40 = vector.broadcast %39 : vector<1x33x1xf32> to vector<1x33x33xf32>
    %41 = arith.subf %37, %40 : vector<1x33x33xf32>
    %42 = math.exp %41 : vector<1x33x33xf32>
    %cst_16 = arith.constant dense<0.000000e+00> : vector<1x33xf32>
    %43 = vector.multi_reduction <add>, %42, %cst_16 [2] : vector<1x33x33xf32> to vector<1x33xf32>
    %44 = vector.shape_cast %43 : vector<1x33xf32> to vector<1x33x1xf32>
    %45 = arith.truncf %42 : vector<1x33x33xf32> to vector<1x33x33xbf16>
    %cst_17 = arith.constant dense<0.000000e+00> : vector<1x33x8xf32>
    %46 = tpu.matmul %45, %36, %cst_17 {dimension_numbers = #tpu.dot_dimension_numbers<[2], [1], [1], [2], [0, 0, 0, 1, 1, 2], [0], [0]>} : vector<1x33x33xbf16>, vector<1x33x8xbf16>, vector<1x33x8xf32> -> vector<1x33x8xf32>
    %47 = tpu.reciprocal %44 {approx = true} : vector<1x33x1xf32> -> vector<1x33x1xf32>
    %48 = vector.broadcast %47 : vector<1x33x1xf32> to vector<1x33x8xf32>
    %49 = arith.mulf %46, %48 : vector<1x33x8xf32>
    %50 = vector.extract_strided_slice %9 {offsets = [0, 0, 16], sizes = [1, 33, 8], strides = [1, 1, 1]} : vector<1x33x32xf32> to vector<1x33x8xf32>
    %51 = arith.truncf %50 : vector<1x33x8xf32> to vector<1x33x8xbf16>
    %52 = vector.extract_strided_slice %10 {offsets = [0, 0, 16], sizes = [1, 33, 8], strides = [1, 1, 1]} : vector<1x33x32xf32> to vector<1x33x8xf32>
    %53 = arith.truncf %52 : vector<1x33x8xf32> to vector<1x33x8xbf16>
    %54 = vector.extract_strided_slice %11 {offsets = [0, 0, 16], sizes = [1, 33, 8], strides = [1, 1, 1]} : vector<1x33x32xf32> to vector<1x33x8xf32>
    %55 = arith.truncf %54 : vector<1x33x8xf32> to vector<1x33x8xbf16>
    %cst_18 = arith.constant dense<0.000000e+00> : vector<1x33x33xf32>
    %56 = tpu.matmul %51, %53, %cst_18 {dimension_numbers = #tpu.dot_dimension_numbers<[2], [2], [1], [1], [0, 0, 0, 1, 1, 1], [0], [0]>} : vector<1x33x8xbf16>, vector<1x33x8xbf16>, vector<1x33x33xf32> -> vector<1x33x33xf32>
    %cst_19 = arith.constant dense<0xFF800000> : vector<1x33xf32>
    %57 = vector.multi_reduction <maximumf>, %56, %cst_19 [2] : vector<1x33x33xf32> to vector<1x33xf32>
    %58 = vector.shape_cast %57 : vector<1x33xf32> to vector<1x33x1xf32>
    %59 = vector.broadcast %58 : vector<1x33x1xf32> to vector<1x33x33xf32>
    %60 = arith.subf %56, %59 : vector<1x33x33xf32>
    %61 = math.exp %60 : vector<1x33x33xf32>
    %cst_20 = arith.constant dense<0.000000e+00> : vector<1x33xf32>
    %62 = vector.multi_reduction <add>, %61, %cst_20 [2] : vector<1x33x33xf32> to vector<1x33xf32>
    %63 = vector.shape_cast %62 : vector<1x33xf32> to vector<1x33x1xf32>
    %64 = arith.truncf %61 : vector<1x33x33xf32> to vector<1x33x33xbf16>
    %cst_21 = arith.constant dense<0.000000e+00> : vector<1x33x8xf32>
    %65 = tpu.matmul %64, %55, %cst_21 {dimension_numbers = #tpu.dot_dimension_numbers<[2], [1], [1], [2], [0, 0, 0, 1, 1, 2], [0], [0]>} : vector<1x33x33xbf16>, vector<1x33x8xbf16>, vector<1x33x8xf32> -> vector<1x33x8xf32>
    %66 = tpu.reciprocal %63 {approx = true} : vector<1x33x1xf32> -> vector<1x33x1xf32>
    %67 = vector.broadcast %66 : vector<1x33x1xf32> to vector<1x33x8xf32>
    %68 = arith.mulf %65, %67 : vector<1x33x8xf32>
    %69 = vector.extract_strided_slice %9 {offsets = [0, 0, 24], sizes = [1, 33, 8], strides = [1, 1, 1]} : vector<1x33x32xf32> to vector<1x33x8xf32>
    %70 = arith.truncf %69 : vector<1x33x8xf32> to vector<1x33x8xbf16>
    %71 = vector.extract_strided_slice %10 {offsets = [0, 0, 24], sizes = [1, 33, 8], strides = [1, 1, 1]} : vector<1x33x32xf32> to vector<1x33x8xf32>
    %72 = arith.truncf %71 : vector<1x33x8xf32> to vector<1x33x8xbf16>
    %73 = vector.extract_strided_slice %11 {offsets = [0, 0, 24], sizes = [1, 33, 8], strides = [1, 1, 1]} : vector<1x33x32xf32> to vector<1x33x8xf32>
    %74 = arith.truncf %73 : vector<1x33x8xf32> to vector<1x33x8xbf16>
    %cst_22 = arith.constant dense<0.000000e+00> : vector<1x33x33xf32>
    %75 = tpu.matmul %70, %72, %cst_22 {dimension_numbers = #tpu.dot_dimension_numbers<[2], [2], [1], [1], [0, 0, 0, 1, 1, 1], [0], [0]>} : vector<1x33x8xbf16>, vector<1x33x8xbf16>, vector<1x33x33xf32> -> vector<1x33x33xf32>
    %cst_23 = arith.constant dense<0xFF800000> : vector<1x33xf32>
    %76 = vector.multi_reduction <maximumf>, %75, %cst_23 [2] : vector<1x33x33xf32> to vector<1x33xf32>
    %77 = vector.shape_cast %76 : vector<1x33xf32> to vector<1x33x1xf32>
    %78 = vector.broadcast %77 : vector<1x33x1xf32> to vector<1x33x33xf32>
    %79 = arith.subf %75, %78 : vector<1x33x33xf32>
    %80 = math.exp %79 : vector<1x33x33xf32>
    %cst_24 = arith.constant dense<0.000000e+00> : vector<1x33xf32>
    %81 = vector.multi_reduction <add>, %80, %cst_24 [2] : vector<1x33x33xf32> to vector<1x33xf32>
    %82 = vector.shape_cast %81 : vector<1x33xf32> to vector<1x33x1xf32>
    %83 = arith.truncf %80 : vector<1x33x33xf32> to vector<1x33x33xbf16>
    %cst_25 = arith.constant dense<0.000000e+00> : vector<1x33x8xf32>
    %84 = tpu.matmul %83, %74, %cst_25 {dimension_numbers = #tpu.dot_dimension_numbers<[2], [1], [1], [2], [0, 0, 0, 1, 1, 2], [0], [0]>} : vector<1x33x33xbf16>, vector<1x33x8xbf16>, vector<1x33x8xf32> -> vector<1x33x8xf32>
    %85 = tpu.reciprocal %82 {approx = true} : vector<1x33x1xf32> -> vector<1x33x1xf32>
    %86 = vector.broadcast %85 : vector<1x33x1xf32> to vector<1x33x8xf32>
    %87 = arith.mulf %84, %86 : vector<1x33x8xf32>
    %88 = tpu.concatenate %30, %49, %68, %87 in 2 : vector<1x33x8xf32>, vector<1x33x8xf32>, vector<1x33x8xf32>, vector<1x33x8xf32> -> vector<1x33x32xf32>
    %89 = vector.shape_cast %88 : vector<1x33x32xf32> to vector<33x32xf32>
    %90 = arith.truncf %89 : vector<33x32xf32> to vector<33x32xbf16>
    %c0_26 = arith.constant 0 : index
    %c0_27 = arith.constant 0 : index
    %91 = vector.load %arg5[%c0_26, %c0_27] : memref<32x32xbf16, #tpu.memory_space<vmem>>, vector<32x32xbf16>
    %cst_28 = arith.constant dense<0.000000e+00> : vector<33x32xf32>
    %92 = tpu.matmul %90, %91, %cst_28 {dimension_numbers = #tpu.dot_dimension_numbers<[1], [0], [0], [1], [0, 0, 1, 1], [], []>} : vector<33x32xbf16>, vector<32x32xbf16>, vector<33x32xf32> -> vector<33x32xf32>
    %c0_29 = arith.constant 0 : index
    %c0_30 = arith.constant 0 : index
    %93 = vector.load %arg6[%c0_29, %c0_30] : memref<1x32xf32, #tpu.memory_space<vmem>>, vector<1x32xf32>
    %94 = vector.broadcast %93 : vector<1x32xf32> to vector<33x32xf32>
    %95 = arith.addf %92, %94 : vector<33x32xf32>
    %96 = vector.shape_cast %95 : vector<33x32xf32> to vector<1x33x32xf32>
    %c0_31 = arith.constant 0 : index
    %c0_32 = arith.constant 0 : index
    %c0_33 = arith.constant 0 : index
    %97 = vector.load %arg7[%c0_31, %c0_32, %c0_33] : memref<1x33x32xf32, #tpu.memory_space<vmem>>, vector<1x33x32xf32>
    tpu.vector_store %arg7[%c0_31, %c0_32, %c0_33], %96 {strides = array<i32>} : memref<1x33x32xf32, #tpu.memory_space<vmem>>, vector<1x33x32xf32>,
    return
  }
  func.func @transform_0(%arg0: i32) -> (i32, i32, i32) {
    %c0_i32 = arith.constant 0 : i32
    %c0_i32_0 = arith.constant 0 : i32
    %c0_i32_1 = arith.constant 0 : i32
    return %arg0, %c0_i32, %c0_i32_0 : i32, i32, i32
  }
  func.func @transform_1(%arg0: i32) -> (i32, i32) {
    %c0_i32 = arith.constant 0 : i32
    %c0_i32_0 = arith.constant 0 : i32
    %c0_i32_1 = arith.constant 0 : i32
    return %c0_i32, %c0_i32_0 : i32, i32
  }
  func.func @transform_2(%arg0: i32) -> (i32, i32) {
    %c0_i32 = arith.constant 0 : i32
    %c0_i32_0 = arith.constant 0 : i32
    %c0_i32_1 = arith.constant 0 : i32
    return %c0_i32, %c0_i32_0 : i32, i32
  }
  func.func @transform_3(%arg0: i32) -> (i32, i32) {
    %c0_i32 = arith.constant 0 : i32
    %c0_i32_0 = arith.constant 0 : i32
    %c0_i32_1 = arith.constant 0 : i32
    return %c0_i32, %c0_i32_0 : i32, i32
  }
  func.func @transform_4(%arg0: i32) -> (i32, i32) {
    %c0_i32 = arith.constant 0 : i32
    %c0_i32_0 = arith.constant 0 : i32
    %c0_i32_1 = arith.constant 0 : i32
    return %c0_i32, %c0_i32_0 : i32, i32
  }
  func.func @transform_5(%arg0: i32) -> (i32, i32) {
    %c0_i32 = arith.constant 0 : i32
    %c0_i32_0 = arith.constant 0 : i32
    %c0_i32_1 = arith.constant 0 : i32
    return %c0_i32, %c0_i32_0 : i32, i32
  }
  func.func @transform_6(%arg0: i32) -> (i32, i32, i32) {
    %c0_i32 = arith.constant 0 : i32
    %c0_i32_0 = arith.constant 0 : i32
    %c0_i32_1 = arith.constant 0 : i32
    return %arg0, %c0_i32, %c0_i32_0 : i32, i32, i32
  }
}

</mosaic_0001>

<bundles_post_ra>
// kernel: tpu_custom_call.1
= control target key start
LH: loop header
LB: loop body
LE: loop exit
PB: predicated region body
PF: predicated region fallthrough
CT: control target
= control target key end

     0   :  { %s1561_s21 = smov 0   ;;  %s1917_s0 = inlined_call_operand.vmem [shape: f32[2,33,32], index: 0, kind: input, shape index: {}]   ;;  %s1918_s1 = inlined_call_operand.vmem [shape: bf16[32,32], index: 1, kind: input, shape index: {}]   ;;  %s1919_s2 = inlined_call_operand.vmem [shape: bf16[32,32], index: 2, kind: input, shape index: {}]   ;;  %s1920_s3 = inlined_call_operand.vmem [shape: bf16[32,32], index: 3, kind: input, shape index: {}]   ;;  %s1921_s4 = inlined_call_operand.vmem [shape: bf16[32,32], index: 4, kind: input, shape index: {}]   ;;  %s1922_s5 = inlined_call_operand.vmem [shape: f32[1,32], index: 5, kind: input, shape index: {}]   ;;  %s1923_s6 = inlined_call_operand.vmem [shape: f32[2,33,32], index: 6, kind: output, shape index: {}]  }
   0x1 LB: > { %s1299_s22 = sadd.s32 4294967295, %s1517_s21   ;;  %p1303_p0 = scmp.ge.s32.totalorder %s1517_s21, 1  ;;  %s1517_s21 = sphi %s1561_s21, %s16_s21  }
   0x2   : > { %p212_p1 = scmp.lt.s32.totalorder %s1517_s21, 3 }
   0x4   : > { %p213_p2 = pnand %p1303_p0, %p212_p1 }
   0x5   : > { %p242_p3 = scmp.lt.s32.totalorder (!%p213_p2), %s1299_s22, 1  ;;  %s1519_s15 = smov (!%p213_p2), 120  }
   0x6   : > { %216 = sbr.rel (%p213_p2) target bundleno = 1215 (0x4bf), region = 44  ;;  %s1520_s16 = smov (!%p213_p2), 112  }
   0x7   : > { %s1521_s17 = smov (!%p213_p2), 104   ;;  %s1523_s18 = smov (!%p213_p2), 8  }
   0x8   : > { %s1524_s19 = smov (!%p213_p2), 16   ;;  %s1525_s20 = smov (!%p213_p2), 24  }
   0xb   : > { %v1377_v0 = vld [vmem:[%s1918_s1 + $0x8] sm:$0xff]  ;;  %v1376_v2 = vld [vmem:[%s1918_s1] sm:$0xff]  ;;  %s1925_s22 = smov (!%p242_p3, %s1299_s22), 1  ;;  %vm277_vm0 = vcmask 261120   ;;  %vm429_vm1 = vcmask 64512   ;;  %vm471_vm2 = vcmask 269312  }
   0xc   : > { %v1379_v1 = vld [vmem:[%s1919_s2 + $0x8] sm:$0xff]  ;;  %293 = vmatpush.bf16.msra.mxu0 %v1377_v0  ;;  %v1378_v3 = vld [vmem:[%s1919_s2] sm:$0xff]  ;;  %s1384_s7 = smul.u32 40, %s1925_s22  ;;  %vm560_vm3 = vcmask 1040384   ;;  %vm484_vm4 = vcmask 262144   ;;  %vm1171_vm5 = vcmask 130048  }
   0xd   : > { %332 = vmatpush.bf16.msra.mxu1 %v1379_v1  ;;  %v1381_v7 = vld [vmem:[%s1920_s3 + $0x8] sm:$0xff]  ;;  %v1380_v8 = vld [vmem:[%s1920_s3] sm:$0xff]  ;;  %vm1177_vm6 = vcmask 195584   ;;  %vm1242_vm7 = vcmask 253952  }
   0xe   : > { %s246_s10 = scalar_lea.vmem %s1917_s0, %s1384_s7  ;;  %371 = vmatpush.bf16.msra.mxu2 %v1381_v7  ;;  %s251_s8 = scalar_lea.vmem %s1923_s6, %s1384_s7 }
   0xf   : > { %v253_v4 = vld [vmem:[%s246_s10] sm:$0xff]  ;;  %v254_v5 = vld [vmem:[%s246_s10 + $0x8] sm:$0xff]  ;;  %v255_v9 = vld [vmem:[%s246_s10 + $0x10] sm:$0xff] }
  0x10   : > { %294 = vmatpush.bf16.msra.mxu0 %v1376_v2  ;;  %v258_v6 = vpack.c.bf16 %v254_v5, %v253_v4  ;;  %v256_v10 = vld [vmem:[%s246_s10 + $0x18] sm:$0xff]  ;;  %v257_v12 = vld [vmem:[%s246_s10 + $0x20] sm:$0x1] }
  0x11   : > { %333 = vmatpush.bf16.msra.mxu1 %v1378_v3  ;;  %v259_v11 = vpack.c.bf16 %v256_v10, %v255_v9  ;;  %v260_v13 = vpack.c.bf16 %v257_v12, %v257_v12 }
  0x12   : > { %372 = vmatpush.bf16.msra.mxu2 %v1380_v8 }
  0x13   : > { %1314 = vmatmul.msk.bf16.vlgmr.msra.gmra.mxu0 %vm277_vm0, %v258_v6 }
  0x14   : > { %1325 = vmatmul.msk.bf16.vlgmr.msra.gmra.mxu1 %vm277_vm0, %v258_v6 }
  0x15   : > { %1336 = vmatmul.msk.bf16.vlgmr.msra.gmra.mxu2 %vm277_vm0, %v258_v6 }
  0x23   : > { %1315 = vmatmul.msk.bf16.gmra.mxu0 %vm277_vm0, %v259_v11 }
  0x24   : > { %1326 = vmatmul.msk.bf16.gmra.mxu1 %vm277_vm0, %v259_v11 }
  0x25   : > { %1337 = vmatmul.msk.bf16.gmra.mxu2 %vm277_vm0, %v259_v11 }
  0x33   : > { %1316 = vmatmul.msk.bf16.gmra.mxu0 %vm277_vm0, %v260_v13 }
  0x34   : > { %1327 = vmatmul.msk.bf16.gmra.mxu1 %vm277_vm0, %v260_v13 }
  0x35   : > { %1338 = vmatmul.msk.bf16.gmra.mxu2 %vm277_vm0, %v260_v13 }
  0x90   : > { %v296_v14 = vpop.f32.mrf.mxu0 }
  0x91   : > { %v335_v15 = vpop.f32.mrf.mxu1  ;;  %v388_v20 = vpack.c.bf16 %v296_v14, %v296_v14 }
  0x92   : > { %v393_v16 = vpack.c.bf16 %v335_v15, %v335_v15 }
  0x93   : > { %v408_v25 = vunpack.c.l.b16 %v388_v20 }
  0x94   : > { %v421_v21 = vunpack.c.l.b16 %v393_v16 }
  0x98   : > { %v298_v17 = vpop.f32.mrf.mxu0  ;;  %v374_v55 = vpop.f32.mrf.mxu2 }
  0x99   : > { %v337_v18 = vpop.f32.mrf.mxu1  ;;  %v389_v22 = vpack.c.bf16 %v298_v17, %v298_v17  ;;  %v398_v56 = vpack.c.bf16 %v374_v55, %v374_v55 }
  0x9a   : > { %v394_v19 = vpack.c.bf16 %v337_v18, %v337_v18 }
  0x9b   : > { %v409_v26 = vunpack.c.l.b16 %v389_v22  ;;  %v541_v58 = vunpack.c.l.b16 %v398_v56 }
  0x9c   : > { %v422_v23 = vunpack.c.l.b16 %v394_v19 }
  0x9d   : > { %v413_v29 = vpack.c.b16 %v409_v26, %v408_v25 }
  0x9e   : > { %v426_v24 = vpack.c.b16 %v422_v23, %v421_v21 }
  0xa0   : > { %605 = vrot.lane.b32.xlu1 %v426_v24, %s1519_s15  ;;  %v301_v27 = vpop.f32.mrf.mxu0  ;;  %v440_v54 = vsel %vm429_vm1, %v426_v24, 0  ;;  %v376_v57 = vpop.f32.mrf.mxu2 }
  0xa1   : > { %v340_v28 = vpop.f32.mrf.mxu1  ;;  %v390_v30 = vpack.c.bf16 %v301_v27, %v301_v27  ;;  %v399_v59 = vpack.c.bf16 %v376_v57, %v376_v57 }
  0xa2   : > { %v395_v31 = vpack.c.bf16 %v340_v28, %v340_v28 }
  0xa3   : > { %v410_v34 = vunpack.c.l.b16 %v390_v30  ;;  %v542_v60 = vunpack.c.l.b16 %v399_v59 }
  0xa4   : > { %v423_v37 = vunpack.c.l.b16 %v395_v31 }
  0xa5   : > { %v1628_v61 = vpack.c.b16 %v542_v60, %v541_v58 }
  0xa8   : > { %599 = vrot.lane.b32.xlu1 %v413_v29, %s1519_s15  ;;  %v303_v32 = vpop.f32.mrf.mxu0  ;;  %v379_v62 = vpop.f32.mrf.mxu2 }
  0xa9   : > { %v342_v33 = vpop.f32.mrf.mxu1  ;;  %v391_v35 = vpack.c.bf16 %v303_v32, %v303_v32  ;;  %v400_v63 = vpack.c.bf16 %v379_v62, %v379_v62 }
  0xaa   : > { %v396_v36 = vpack.c.bf16 %v342_v33, %v342_v33 }
  0xab   : > { %v411_v38 = vunpack.c.l.b16 %v391_v35  ;;  %v543_v2 = vunpack.c.l.b16 %v400_v63 }
  0xac   : > { %v424_v39 = vunpack.c.l.b16 %v396_v36 }
  0xad   : > { %v414_v40 = vpack.c.b16 %v411_v38, %v410_v34 }
  0xae   : > { %v427_v41 = vpack.c.b16 %v424_v39, %v423_v37  ;;  %v1522_v37 = vmov 0  }
  0xaf   : > { %601 = vrot.lane.b32.xlu2 %v414_v40, %s1519_s15  ;;  %v1654_v38 = vsel %vm560_vm3, 65535, %v1522_v37 }
  0xb0   : > { %776 = vrot.lane.b32.xlu1 %v427_v41, %s1520_s16  ;;  %v306_v43 = vpop.f32.mrf.mxu0  ;;  %v443_v53 = vsel %vm429_vm1, %v427_v41, 0  ;;  %v381_v1 = vpop.f32.mrf.mxu2 }
  0xb1   : > { %v345_v42 = vpop.f32.mrf.mxu1  ;;  %v392_v46 = vpack.c.bf16 %v306_v43, %v306_v43  ;;  %v401_v3 = vpack.c.bf16 %v381_v1, %v381_v1 }
  0xb2   : > { %v397_v44 = vpack.c.bf16 %v345_v42, %v345_v42 }
  0xb3   : > { %v412_v49 = vunpack.c.l.b16 %v392_v46  ;;  %v544_v4 = vunpack.c.l.b16 %v401_v3 }
  0xb4   : > { %v425_v45 = vunpack.c.l.b16 %v397_v44 }
  0xb5   : > { %v415_v52 = vpack.c.b16 %v412_v49, %v412_v49  ;;  %v1632_v5 = vpack.c.b16 %v544_v4, %v543_v2 }
  0xb6   : > { %v428_v47 = vpack.c.b16 %v425_v45, %v425_v45 }
  0xb8   : > { %609 = vrot.lane.b32.xlu0 %v428_v47, %s1519_s15  ;;  %774 = vrot.lane.b32.xlu1 %v426_v24, %s1520_s16  ;;  %v446_v48 = vsel %vm429_vm1, %v428_v47, 0  ;;  %v308_v51 = vpop.f32.mrf.mxu0  ;;  %v384_v9 = vpop.f32.mrf.mxu2 }
  0xb9   : > { %778 = vrot.lane.b32.xlu2 %v428_v47, %s1520_s16  ;;  %v347_v50 = vpop.f32.mrf.mxu1  ;;  %453 = vmatpush.bf16.xpose.msra.mxu3 %v446_v48  ;;  %v402_v10 = vpack.c.bf16 %v384_v9, %v384_v9 }
  0xbb   : > { %v545_v11 = vunpack.c.l.b16 %v402_v10 }
  0xbd   : > { %v548_v12 = vpack.c.b16 %v545_v11, %v545_v11 }
  0xbf   : > { %v564_v39 = vand.u32 %v1654_v38, %v548_v12 }
  0xc0   : > { %607 = vrot.lane.b32.xlu0 %v427_v41, %s1519_s15  ;;  %937 = vrot.lane.b32.xlu1 %v413_v29, %s1521_s17  ;;  %v386_v14 = vpop.f32.mrf.mxu2 }
  0xc1   : > { %603 = vrot.lane.b32.xlu2 %v415_v52, %s1519_s15  ;;  %454 = vmatpush.bf16.xpose.msra.mxu3 %v443_v53 }
  0xc2   : > { %571 = vmatpush.bf16.msrb.mxu0 %v564_v39 }
  0xc6   : > { %572 = vmatpush.bf16.msrb.mxu0 %v1632_v5 }
  0xc8   : > { %947 = vrot.lane.b32.xlu0 %v428_v47, %s1521_s17  ;;  %772 = vrot.lane.b32.xlu1 %v415_v52, %s1520_s16 }
  0xc9   : > { %943 = vrot.lane.b32.xlu2 %v426_v24, %s1521_s17  ;;  %455 = vmatpush.bf16.xpose.msra.mxu3 %v440_v54 }
  0xca   : > { %573 = vmatpush.bf16.msrb.mxu0 %v1628_v61 }
  0xd0   : > { %945 = vrot.lane.b32.xlu0 %v427_v41, %s1521_s17  ;;  %1339 = vmatmul.msk.bf16.vlgmr.msra.gmra.mxu3 %vm429_vm1, %v413_v29 }
  0xd1   : > { %770 = vrot.lane.b32.xlu2 %v414_v40, %s1520_s16  ;;  %717 = vrot.lane.b32.xlu1 %v1632_v5, %s1519_s15 }
  0xd8   : > { %768 = vrot.lane.b32.xlu0 %v413_v29, %s1520_s16 }
  0xd9   : > { %941 = vrot.lane.b32.xlu2 %v415_v52, %s1521_s17  ;;  %1057 = vrot.lane.b32.xlu1 %v548_v12, %s1521_s17 }
  0xe0   : > { %1340 = vmatmul.msk.bf16.gmra.mxu3 %vm429_vm1, %v414_v40  ;;  %939 = vrot.lane.b32.xlu0 %v414_v40, %s1521_s17 }
  0xe1   : > { %715 = vrot.lane.b32.xlu2 %v1628_v61, %s1519_s15 }
  0xe8   : > { %719 = vrot.lane.b32.xlu0 %v548_v12, %s1519_s15 }
  0xf0   : > { %1341 = vmatmul.msk.bf16.gmra.mxu3 %vm429_vm1, %v415_v52  ;;  %888 = vrot.lane.b32.xlu0 %v548_v12, %s1520_s16 }
 0x109   : > { %v602_v0 = vpop.permute.xlu2 %601 }
 0x112   : > { %v606_v6 = vpop.permute.xlu1 %605 }
 0x113   : > { %v779_v7 = vpop.permute.xlu2 %778  ;;  %v621_v25 = vsel %vm429_vm1, %v606_v6, 0 }
 0x114   : > { %v796_v8 = vsel %vm429_vm1, %v779_v7, 0 }
 0x115   : > { %803 = vmatpush.bf16.xpose.msrb.mxu3 %v796_v8 }
 0x11a   : > { %v600_v13 = vpop.permute.xlu1 %599 }
 0x11b   : > { %v604_v26 = vpop.permute.xlu2 %603 }
 0x122   : > { %v777_v15 = vpop.permute.xlu1 %776 }
 0x123   : > { %v793_v16 = vsel %vm429_vm1, %v777_v15, 0  ;;  %v944_v29 = vpop.permute.xlu2 %943 }
 0x124   : > { %804 = vmatpush.bf16.xpose.msrb.mxu3 %v793_v16  ;;  %v959_v31 = vsel %vm429_vm1, %v944_v29, 0 }
 0x12a   : > { %v610_v17 = vpop.permute.xlu0 %609  ;;  %v775_v18 = vpop.permute.xlu1 %774 }
 0x12b   : > { %v627_v19 = vsel %vm429_vm1, %v610_v17, 0  ;;  %v790_v20 = vsel %vm429_vm1, %v775_v18, 0  ;;  %v771_v34 = vpop.permute.xlu2 %770 }
 0x12c   : > { %634 = vmatpush.bf16.xpose.msrb.mxu1 %v627_v19  ;;  %805 = vmatpush.bf16.xpose.msrb.mxu3 %v790_v20 }
 0x132   : > { %v608_v21 = vpop.permute.xlu0 %607  ;;  %v938_v40 = vpop.permute.xlu1 %937 }
 0x133   : > { %v624_v22 = vsel %vm429_vm1, %v608_v21, 0  ;;  %v942_v50 = vpop.permute.xlu2 %941 }
 0x134   : > { %635 = vmatpush.bf16.xpose.msrb.mxu1 %v624_v22 }
 0x13a   : > { %v948_v23 = vpop.permute.xlu0 %947  ;;  %v773_v43 = vpop.permute.xlu1 %772 }
 0x13b   : > { %v965_v24 = vsel %vm429_vm1, %v948_v23, 0  ;;  %v716_v54 = vpop.permute.xlu2 %715 }
 0x13c   : > { %636 = vmatpush.bf16.xpose.msrb.mxu1 %v621_v25 }
 0x142   : > { %v946_v27 = vpop.permute.xlu0 %945 }
 0x143   : > { %v962_v28 = vsel %vm429_vm1, %v946_v27, 0  ;;  %1345 = vmatmul.msk.bf16.vlgmr.msrb.gmra.mxu1 %vm429_vm1, %v600_v13  ;;  %v718_v56 = vpop.permute.xlu1 %717 }
 0x144   : > { %972 = vmatpush.bf16.xpose.msra.mxu1 %v965_v24 }
 0x14a   : > { %v769_v30 = vpop.permute.xlu0 %768 }
 0x14b   : > { %1351 = vmatmul.msk.bf16.vlgmr.msrb.gmra.mxu3 %vm429_vm1, %v769_v30 }
 0x14c   : > { %973 = vmatpush.bf16.xpose.msra.mxu1 %v962_v28 }
 0x152   : > { %v940_v49 = vpop.permute.xlu0 %939 }
 0x153   : > { %v457_v32 = vpop.f32.mrf.mxu3  ;;  %1346 = vmatmul.msk.bf16.gmra.mxu1 %vm429_vm1, %v602_v0 }
 0x154   : > { %974 = vmatpush.bf16.xpose.msra.mxu1 %v959_v31  ;;  %v472_v33 = vsel %vm471_vm2, %v457_v32, -inf }
 0x155   : > { %473 = vmax.xlane.f32.xlu2 %v472_v33 }
 0x15a   : > { %v720_v51 = vpop.permute.xlu0 %719 }
 0x15b   : > { %v459_v35 = vpop.f32.mrf.mxu3  ;;  %1352 = vmatmul.msk.bf16.gmra.mxu3 %vm429_vm1, %v771_v34  ;;  %v733_v52 = vand.u32 %v720_v51, %v1654_v38 }
 0x15c   : > { %v475_v36 = vsel %vm471_vm2, %v459_v35, -inf }
 0x15d   : > { %476 = vmax.xlane.f32.xlu2 %v475_v36  ;;  %740 = vmatpush.bf16.msrb.mxu2 %v733_v52 }
 0x161   : > { %741 = vmatpush.bf16.msrb.mxu2 %v718_v56 }
 0x162   : > { %v889_v53 = vpop.permute.xlu0 %888 }
 0x163   : > { %v1657_v41 = vpop.f32.mrf.mxu3  ;;  %1347 = vmatmul.msk.bf16.gmra.mxu1 %vm429_vm1, %v604_v26  ;;  %v902_v55 = vand.u32 %v889_v53, %v1654_v38 }
 0x164   : > { %v478_v42 = vsel %vm471_vm2, %v1657_v41, -inf }
 0x165   : > { %479 = vmax.xlane.f32.xlu2 %v478_v42  ;;  %909 = vmatpush.bf16.msra.mxu0 %v902_v55 }
 0x166   : > { %742 = vmatpush.bf16.msrb.mxu2 %v716_v54 }
 0x16b   : > { %v1664_v44 = vpop.f32.mrf.mxu3  ;;  %1353 = vmatmul.msk.bf16.gmra.mxu3 %vm429_vm1, %v773_v43 }
 0x16c   : > { %v481_v45 = vsel %vm471_vm2, %v1664_v44, -inf }
 0x16d   : > { %482 = vmax.xlane.f32.xlu0 %v481_v45 }
 0x173   : > { %v1669_v46 = vpop.f32.mrf.mxu3  ;;  %1357 = vmatmul.msk.bf16.vlgmr.msra.gmra.mxu1 %vm429_vm1, %v938_v40 }
 0x174   : > { %v485_v47 = vsel %vm484_vm4, %v1669_v46, -inf }
 0x175   : > { %486 = vmax.xlane.f32.xlu0 %v485_v47 }
 0x17b   : > { %v469_v48 = vpop.f32.mrf.mxu3 }
 0x183   : > { %1358 = vmatmul.msk.bf16.gmra.mxu1 %vm429_vm1, %v940_v49  ;;  %v1058_v49 = vpop.permute.xlu1 %1057 }
 0x184   : > { %v1071_v51 = vand.u32 %v1058_v49, %v1654_v38 }
 0x186   : > { %1078 = vmatpush.bf16.msra.mxu2 %v1071_v51 }
 0x193   : > { %1359 = vmatmul.msk.bf16.gmra.mxu1 %vm429_vm1, %v942_v50 }
 0x1c0   : > { %v1678_v57 = vpop.f32.mrf.mxu1 }
 0x1c1   : > { %v652_v58 = vsel %vm471_vm2, %v1678_v57, -inf }
 0x1c2   : > { %653 = vmax.xlane.f32.xlu0 %v652_v58 }
 0x1c8   : > { %v1682_v59 = vpop.f32.mrf.mxu1  ;;  %v474_v60 = vpop.xlane.xlu2 %473 }
 0x1c9   : > { %v488_v62 = vsub.f32 %v457_v32, %v474_v60  ;;  %v655_v63 = vsel %vm471_vm2, %v1682_v59, -inf }
 0x1ca   : > { %656 = vmax.xlane.f32.xlu1 %v655_v63 }
 0x1cb   : > { %v493_v0 = vmul.f32 1.442695, %v488_v62 }
 0x1cd   : > { %1431 = vpow2.f32 %v493_v0 }
 0x1ce   : > { %v1686_v1 = vpop.f32.mrf.mxu3 }
 0x1cf   : > { %v821_v2 = vsel %vm471_vm2, %v1686_v1, -inf }
 0x1d0   : > { %v1690_v3 = vpop.f32.mrf.mxu1  ;;  %v477_v4 = vpop.xlane.xlu2 %476  ;;  %822 = vmax.xlane.f32.xlu0 %v821_v2 }
 0x1d1   : > { %v489_v6 = vsub.f32 %v459_v35, %v477_v4  ;;  %v658_v10 = vsel %vm471_vm2, %v1690_v3, -inf }
 0x1d3   : > { %v495_v7 = vmul.f32 1.442695, %v489_v6  ;;  %v1694_v9 = vpop.eup %1431 }
 0x1d4   : > { %v518_v16 = vpack.c.bf16 %v1694_v9, %v1694_v9  ;;  %v503_v62 = vsel %vm471_vm2, %v1694_v9, 0.0 }
 0x1d5   : > { %1433 = vpow2.f32 %v495_v7 }
 0x1d6   : > { %v1692_v8 = vpop.f32.mrf.mxu3  ;;  %v528_v20 = vunpack.c.l.b16 %v518_v16 }
 0x1d7   : > { %v824_v11 = vsel %vm471_vm2, %v1692_v8, -inf }
 0x1d8   : > { %v1700_v12 = vpop.f32.mrf.mxu1  ;;  %v480_v13 = vpop.xlane.xlu2 %479  ;;  %659 = vmax.xlane.f32.xlu0 %v658_v10  ;;  %825 = vmax.xlane.f32.xlu2 %v824_v11 }
 0x1d9   : > { %v490_v14 = vsub.f32 %v1657_v41, %v480_v13  ;;  %v661_v15 = vsel %vm471_vm2, %v1700_v12, -inf }
 0x1da   : > { %662 = vmax.xlane.f32.xlu1 %v661_v15 }
 0x1db   : > { %v1707_v17 = vpop.eup %1433  ;;  %v497_v19 = vmul.f32 1.442695, %v490_v14 }
 0x1dc   : > { %v519_v18 = vpack.c.bf16 %v1707_v17, %v1707_v17 }
 0x1dd   : > { %1435 = vpow2.f32 %v497_v19 }
 0x1de   : > { %v529_v21 = vunpack.c.l.b16 %v519_v18  ;;  %v1711_v22 = vpop.f32.mrf.mxu3 }
 0x1e0   : > { %v483_v23 = vpop.xlane.xlu0 %482  ;;  %v1713_v24 = vpop.f32.mrf.mxu1  ;;  %v533_v25 = vpack.c.b16 %v529_v21, %v528_v20 }
 0x1e1   : > { %v491_v26 = vsub.f32 %v1664_v44, %v483_v23  ;;  %v664_v27 = vsel %vm484_vm4, %v1713_v24, -inf }
 0x1e2   : > { %665 = vmax.xlane.f32.xlu1 %v664_v27  ;;  %1342 = vmatmul.msk.bf16.vlgmr.msrb.gmra.mxu0 %vm471_vm2, %v533_v25 }
 0x1e3   : > { %v499_v28 = vmul.f32 1.442695, %v491_v26  ;;  %v1721_v30 = vpop.eup %1435 }
 0x1e4   : > { %v520_v34 = vpack.c.bf16 %v1721_v30, %v1721_v30 }
 0x1e5   : > { %1437 = vpow2.f32 %v499_v28 }
 0x1e6   : > { %v1719_v29 = vpop.f32.mrf.mxu3  ;;  %v530_v39 = vunpack.c.l.b16 %v520_v34 }
 0x1e7   : > { %v830_v4 = vsel %vm471_vm2, %v1719_v29, -inf }
 0x1e8   : > { %v650_v31 = vpop.f32.mrf.mxu1  ;;  %v487_v32 = vpop.xlane.xlu0 %486 }
 0x1e9   : > { %v492_v33 = vsub.f32 %v1669_v46, %v487_v32 }
 0x1eb   : > { %v1726_v35 = vpop.eup %1437  ;;  %v501_v36 = vmul.f32 1.442695, %v492_v33 }
 0x1ec   : > { %1053 = vrot.lane.b32.xlu0 %v1628_v61, %s1521_s17  ;;  %v521_v37 = vpack.c.bf16 %v1726_v35, %v1726_v35 }
 0x1ed   : > { %1439 = vpow2.f32 %v501_v36 }
 0x1ee   : > { %v531_v40 = vunpack.c.l.b16 %v521_v37  ;;  %v1732_v41 = vpop.f32.mrf.mxu3 }
 0x1f0   : > { %v1734_v42 = vpop.f32.mrf.mxu1  ;;  %v534_v43 = vpack.c.b16 %v531_v40, %v530_v39 }
 0x1f1   : > { %v990_v44 = vsel %vm471_vm2, %v1734_v42, -inf }
 0x1f2   : > { %1343 = vmatmul.msk.bf16.gmra.mxu0 %vm471_vm2, %v534_v43  ;;  %991 = vmax.xlane.f32.xlu2 %v990_v44 }
 0x1f3   : > { %v1739_v45 = vpop.eup %1439 }
 0x1f4   : > { %v522_v48 = vpack.c.bf16 %v1739_v45, %v1739_v45 }
 0x1f6   : > { %v819_v46 = vpop.f32.mrf.mxu3  ;;  %v532_v50 = vunpack.c.l.b16 %v522_v48 }
 0x1f8   : > { %v1741_v47 = vpop.f32.mrf.mxu1  ;;  %v535_v53 = vpack.c.b16 %v532_v50, %v532_v50 }
 0x1f9   : > { %v993_v60 = vsel %vm471_vm2, %v1741_v47, -inf }
 0x1fb   : > { %886 = vrot.lane.b32.xlu1 %v1632_v5, %s1520_s16 }
 0x200   : > { %v1748_v52 = vpop.f32.mrf.mxu1 }
 0x202   : > { %1344 = vmatmul.msk.bf16.gmra.mxu0 %vm471_vm2, %v535_v53 }
 0x208   : > { %v1751_v54 = vpop.f32.mrf.mxu1 }
 0x209   : > { %v999_v56 = vsel %vm471_vm2, %v1751_v54, -inf }
 0x20a   : > { %1055 = vrot.lane.b32.xlu2 %v1632_v5, %s1521_s17  ;;  %v996_v5 = vsel %vm471_vm2, %v1748_v52, -inf }
 0x210   : > { %v1755_v55 = vpop.f32.mrf.mxu1 }
 0x211   : > { %v1002_v38 = vsel %vm484_vm4, %v1755_v55, -inf }
 0x216   : > { %1000 = vmax.xlane.f32.xlu0 %v999_v56 }
 0x218   : > { %v988_v58 = vpop.f32.mrf.mxu1 }
 0x21e   : > { %1003 = vmax.xlane.f32.xlu0 %v1002_v38 }
 0x225   : > { %994 = vmax.xlane.f32.xlu1 %v993_v60 }
 0x226   : > { %504 = vadd.xlane.f32.xlu0 %v503_v62 }
 0x233   : > { %997 = vmax.xlane.f32.xlu2 %v996_v5 }
 0x235   : > { %v654_v63 = vpop.xlane.xlu0 %653 }
 0x236   : > { %v667_v0 = vsub.f32 %v1678_v57, %v654_v63  ;;  %v833_v57 = vsel %vm484_vm4, %v1732_v41, -inf }
 0x238   : > { %v672_v2 = vmul.f32 1.442695, %v667_v0  ;;  %v827_v0 = vsel %vm471_vm2, %v1711_v22, -inf }
 0x23a   : > { %1441 = vpow2.f32 %v672_v2 }
 0x23b   : > { %831 = vmax.xlane.f32.xlu2 %v830_v4 }
 0x23d   : > { %v657_v6 = vpop.xlane.xlu1 %656 }
 0x23e   : > { %v668_v7 = vsub.f32 %v1682_v59, %v657_v6  ;;  %884 = vrot.lane.b32.xlu1 %v1628_v61, %s1520_s16 }
 0x240   : > { %v1442_v9 = vpop.eup %1441  ;;  %v674_v10 = vmul.f32 1.442695, %v668_v7 }
 0x241   : > { %v682_v11 = vsel %vm471_vm2, %v1442_v9, 0.0  ;;  %v697_v16 = vpack.c.bf16 %v1442_v9, %v1442_v9 }
 0x242   : > { %1443 = vpow2.f32 %v674_v10  ;;  %683 = vadd.xlane.f32.xlu0 %v682_v11  ;;  %v506_v10 = vsel %vm471_vm2, %v1707_v17, 0.0 }
 0x243   : > { %v823_v13 = vpop.xlane.xlu0 %822  ;;  %834 = vmax.xlane.f32.xlu2 %v833_v57  ;;  %v707_v59 = vunpack.c.l.b16 %v697_v16 }
 0x244   : > { %v836_v14 = vsub.f32 %v1686_v1, %v823_v13 }
 0x246   : > { %v841_v15 = vmul.f32 1.442695, %v836_v14 }
 0x248   : > { %v1777_v18 = vpop.eup %1443  ;;  %1445 = vpow2.f32 %v841_v15 }
 0x249   : > { %v698_v61 = vpack.c.bf16 %v1777_v18, %v1777_v18  ;;  %v685_v13 = vsel %vm471_vm2, %v1777_v18, 0.0 }
 0x24b   : > { %v708_v19 = vunpack.c.l.b16 %v698_v61  ;;  %v660_v20 = vpop.xlane.xlu0 %659  ;;  %v826_v21 = vpop.xlane.xlu2 %825 }
 0x24c   : > { %v669_v23 = vsub.f32 %v1690_v3, %v660_v20  ;;  %v837_v25 = vsub.f32 %v1692_v8, %v826_v21 }
 0x24d   : > { %v663_v26 = vpop.xlane.xlu1 %662  ;;  %v712_v27 = vpack.c.b16 %v708_v19, %v707_v59 }
 0x24e   : > { %v1446_v28 = vpop.eup %1445  ;;  %v676_v1 = vmul.f32 1.442695, %v669_v23  ;;  %v843_v31 = vmul.f32 1.442695, %v837_v25  ;;  %v670_v32 = vsub.f32 %v1700_v12, %v663_v26 }
 0x24f   : > { %1348 = vmatmul.msk.bf16.vlgmr.msrb.gmra.mxu2 %vm471_vm2, %v712_v27  ;;  %v851_v33 = vsel %vm471_vm2, %v1446_v28, 0.0  ;;  %v866_v37 = vpack.c.bf16 %v1446_v28, %v1446_v28 }
 0x250   : > { %1447 = vpow2.f32 %v676_v1  ;;  %v678_v34 = vmul.f32 1.442695, %v670_v32  ;;  %852 = vadd.xlane.f32.xlu2 %v851_v33 }
 0x251   : > { %1449 = vpow2.f32 %v843_v31  ;;  %v1788_v49 = vunpack.c.l.b16 %v866_v37 }
 0x252   : > { %1451 = vpow2.f32 %v678_v34 }
 0x255   : > { %v666_v36 = vpop.xlane.xlu1 %665 }
 0x256   : > { %v1448_v3 = vpop.eup %1447  ;;  %v671_v8 = vsub.f32 %v1713_v24, %v666_v36 }
 0x257   : > { %v1450_v39 = vpop.eup %1449  ;;  %v699_v40 = vpack.c.bf16 %v1448_v3, %v1448_v3  ;;  %v688_v38 = vsel %vm471_vm2, %v1448_v3, 0.0 }
 0x258   : > { %v1452_v43 = vpop.eup %1451  ;;  %v867_v44 = vpack.c.bf16 %v1450_v39, %v1450_v39  ;;  %v680_v46 = vmul.f32 1.442695, %v671_v8  ;;  %v854_v12 = vsel %vm471_vm2, %v1450_v39, 0.0 }
 0x259   : > { %855 = vadd.xlane.f32.xlu0 %v854_v12  ;;  %v700_v48 = vpack.c.bf16 %v1452_v43, %v1452_v43  ;;  %v709_v51 = vunpack.c.l.b16 %v699_v40  ;;  %v691_v15 = vsel %vm471_vm2, %v1452_v43, 0.0 }
 0x25a   : > { %v1790_v50 = vunpack.c.l.b16 %v867_v44  ;;  %1453 = vpow2.f32 %v680_v46 }
 0x25b   : > { %v710_v53 = vunpack.c.l.b16 %v700_v48 }
 0x25c   : > { %v881_v56 = vpack.c.b16 %v1790_v50, %v1788_v49 }
 0x25d   : > { %v713_v24 = vpack.c.b16 %v710_v53, %v709_v51 }
 0x25e   : > { %v1054_v11 = vpop.permute.xlu0 %1053 }
 0x25f   : > { %v575_v58 = vpop.f32.mrf.mxu0  ;;  %1349 = vmatmul.msk.bf16.gmra.mxu2 %vm471_vm2, %v713_v24 }
 0x260   : > { %v1796_v60 = vpop.eup %1453 }
 0x261   : > { %689 = vadd.xlane.f32.xlu0 %v688_v38  ;;  %v701_v5 = vpack.c.bf16 %v1796_v60, %v1796_v60  ;;  %v694_v50 = vsel %vm484_vm4, %v1796_v60, 0.0 }
 0x263   : > { %v711_v2 = vunpack.c.l.b16 %v701_v5 }
 0x265   : > { %v992_v62 = vpop.xlane.xlu2 %991  ;;  %v714_v7 = vpack.c.b16 %v711_v2, %v711_v2 }
 0x266   : > { %v1005_v59 = vsub.f32 %v1734_v42, %v992_v62 }
 0x267   : > { %v1800_v63 = vpop.f32.mrf.mxu0 }
 0x268   : > { %828 = vmax.xlane.f32.xlu1 %v827_v0  ;;  %v1010_v17 = vmul.f32 1.442695, %v1005_v59 }
 0x26a   : > { %1455 = vpow2.f32 %v1010_v17 }
 0x26d   : > { %v887_v4 = vpop.permute.xlu1 %886  ;;  %v1056_v6 = vpop.permute.xlu2 %1055 }
 0x26e   : > { %910 = vmatpush.bf16.msra.mxu0 %v887_v4  ;;  %1079 = vmatpush.bf16.msra.mxu2 %v1056_v6 }
 0x26f   : > { %v1804_v9 = vpop.f32.mrf.mxu0  ;;  %1350 = vmatmul.msk.bf16.gmra.mxu2 %vm471_vm2, %v714_v7 }
 0x270   : > { %507 = vadd.xlane.f32.xlu1 %v506_v10  ;;  %v1456_v18 = vpop.eup %1455 }
 0x271   : > { %v1035_v1 = vpack.c.bf16 %v1456_v18, %v1456_v18  ;;  %v1020_v4 = vsel %vm471_vm2, %v1456_v18, 0.0 }
 0x272   : > { %1080 = vmatpush.bf16.msra.mxu2 %v1054_v11 }
 0x273   : > { %v1045_v33 = vunpack.c.l.b16 %v1035_v1 }
 0x277   : > { %v1809_v57 = vpop.f32.mrf.mxu0 }
 0x278   : > { %686 = vadd.xlane.f32.xlu1 %v685_v13 }
 0x27f   : > { %v1813_v14 = vpop.f32.mrf.mxu0 }
 0x280   : > { %692 = vadd.xlane.f32.xlu1 %v691_v15 }
 0x287   : > { %v587_v16 = vpop.f32.mrf.mxu0 }
 0x289   : > { %v1001_v61 = vpop.xlane.xlu0 %1000 }
 0x28a   : > { %v1008_v27 = vsub.f32 %v1751_v54, %v1001_v61 }
 0x28c   : > { %v1016_v32 = vmul.f32 1.442695, %v1008_v27 }
 0x291   : > { %v1004_v19 = vpop.xlane.xlu0 %1003 }
 0x292   : > { %v1009_v39 = vsub.f32 %v1755_v55, %v1004_v19 }
 0x294   : > { %v1018_v48 = vmul.f32 1.442695, %v1009_v39 }
 0x298   : > { %v995_v20 = vpop.xlane.xlu1 %994 }
 0x299   : > { %v1006_v21 = vsub.f32 %v1741_v47, %v995_v20  ;;  %v505_v23 = vpop.xlane.xlu0 %504 }
 0x29a   : > { %1457 = vrcp.f32 %v505_v23 }
 0x29b   : > { %v1012_v25 = vmul.f32 1.442695, %v1006_v21 }
 0x29d   : > { %1459 = vpow2.f32 %v1012_v25 }
 0x29e   : > { %1461 = vpow2.f32 %v1016_v32 }
 0x2a0   : > { %v1458_v26 = vpop.eup %1457 }
 0x2a1   : > { %v1819_v28 = vmul.f32 %v1458_v26, %v575_v58 }
 0x2a3   : > { %v1821_v31 = vpop.eup %1459 }
 0x2a4   : > { %v1036_v42 = vpack.c.bf16 %v1821_v31, %v1821_v31  ;;  %v1827_v8 = vpop.eup %1461 }
 0x2a6   : > { %v1046_v34 = vunpack.c.l.b16 %v1036_v42  ;;  %v998_v47 = vpop.xlane.xlu2 %997 }
 0x2a7   : > { %v1007_v36 = vsub.f32 %v1748_v52, %v998_v47  ;;  %v1038_v52 = vpack.c.bf16 %v1827_v8, %v1827_v8 }
 0x2a8   : > { %v1050_v3 = vpack.c.b16 %v1046_v34, %v1045_v33  ;;  %v1029_v34 = vsel %vm471_vm2, %v1827_v8, 0.0 }
 0x2a9   : > { %v1014_v37 = vmul.f32 1.442695, %v1007_v36  ;;  %v1048_v55 = vunpack.c.l.b16 %v1038_v52 }
 0x2aa   : > { %1360 = vmatmul.msk.bf16.vlgmr.msra.gmra.mxu2 %vm471_vm2, %v1050_v3 }
 0x2ab   : > { %1463 = vpow2.f32 %v1014_v37 }
 0x2ae   : > { %v832_v54 = vpop.xlane.xlu2 %831 }
 0x2af   : > { %v839_v40 = vsub.f32 %v1719_v29, %v832_v54 }
 0x2b0   : > { %v885_v43 = vpop.permute.xlu1 %884 }
 0x2b1   : > { %v1464_v44 = vpop.eup %1463  ;;  %v847_v46 = vmul.f32 1.442695, %v839_v40  ;;  %911 = vmatpush.bf16.msra.mxu0 %v885_v43 }
 0x2b2   : > { %v1037_v12 = vpack.c.bf16 %v1464_v44, %v1464_v44  ;;  %v1026_v7 = vsel %vm471_vm2, %v1464_v44, 0.0 }
 0x2b3   : > { %1465 = vpow2.f32 %v847_v46 }
 0x2b4   : > { %1354 = vmatmul.msk.bf16.vlgmr.msra.gmra.mxu0 %vm471_vm2, %v881_v56  ;;  %v1047_v51 = vunpack.c.l.b16 %v1037_v12  ;;  %1467 = vpow2.f32 %v1018_v48 }
 0x2b5   : > { %v684_v60 = vpop.xlane.xlu0 %683 }
 0x2b6   : > { %v835_v53 = vpop.xlane.xlu2 %834  ;;  %v1051_v24 = vpack.c.b16 %v1048_v55, %v1047_v51 }
 0x2b7   : > { %v840_v29 = vsub.f32 %v1732_v41, %v835_v53 }
 0x2b9   : > { %v1466_v58 = vpop.eup %1465  ;;  %v849_v38 = vmul.f32 1.442695, %v840_v29 }
 0x2ba   : > { %1361 = vmatmul.msk.bf16.gmra.mxu2 %vm471_vm2, %v1051_v24  ;;  %v860_v62 = vsel %vm471_vm2, %v1466_v58, 0.0  ;;  %v1468_v5 = vpop.eup %1467  ;;  %v869_v59 = vpack.c.bf16 %v1466_v58, %v1466_v58 }
 0x2bb   : > { %1469 = vpow2.f32 %v849_v38  ;;  %861 = vadd.xlane.f32.xlu0 %v860_v62  ;;  %v1039_v0 = vpack.c.bf16 %v1468_v5, %v1468_v5  ;;  %v1032_v43 = vsel %vm484_vm4, %v1468_v5, 0.0 }
 0x2bc   : > { %v879_v25 = vunpack.c.l.b16 %v869_v59 }
 0x2bd   : > { %v1049_v41 = vunpack.c.l.b16 %v1039_v0 }
 0x2bf   : > { %v1052_v2 = vpack.c.b16 %v1049_v41, %v1049_v41 }
 0x2c1   : > { %v1470_v49 = vpop.eup %1469 }
 0x2c2   : > { %v863_v56 = vsel %vm484_vm4, %v1470_v49, 0.0  ;;  %v870_v33 = vpack.c.bf16 %v1470_v49, %v1470_v49  ;;  %v512_v49 = vsel %vm471_vm2, %v1726_v35, 0.0 }
 0x2c3   : > { %695 = vadd.xlane.f32.xlu0 %v694_v50  ;;  %864 = vadd.xlane.f32.xlu1 %v863_v56  ;;  %v853_v51 = vpop.xlane.xlu2 %852 }
 0x2c4   : > { %v880_v47 = vunpack.c.l.b16 %v870_v33 }
 0x2c6   : > { %v883_v39 = vpack.c.b16 %v880_v47, %v880_v47 }
 0x2ca   : > { %1362 = vmatmul.msk.bf16.gmra.mxu2 %vm471_vm2, %v1052_v2 }
 0x2cb   : > { %1021 = vadd.xlane.f32.xlu1 %v1020_v4 }
 0x2cc   : > { %v856_v17 = vpop.xlane.xlu0 %855 }
 0x2d2   : > { %v744_v6 = vpop.f32.mrf.mxu2 }
 0x2d3   : > { %1027 = vadd.xlane.f32.xlu1 %v1026_v7 }
 0x2d4   : > { %v690_v1 = vpop.xlane.xlu0 %689 }
 0x2da   : > { %v746_v10 = vpop.f32.mrf.mxu2 }
 0x2db   : > { %v829_v11 = vpop.xlane.xlu1 %828 }
 0x2dc   : > { %v838_v13 = vsub.f32 %v1711_v22, %v829_v11  ;;  %v1023_v22 = vsel %vm471_vm2, %v1821_v31, 0.0  ;;  %v509_v11 = vsel %vm471_vm2, %v1721_v30, 0.0 }
 0x2de   : > { %v845_v15 = vmul.f32 1.442695, %v838_v13 }
 0x2e0   : > { %1471 = vpow2.f32 %v845_v15 }
 0x2e1   : > { %1473 = vrcp.f32 %v690_v1 }
 0x2e2   : > { %v749_v16 = vpop.f32.mrf.mxu2 }
 0x2e3   : > { %v1847_v61 = vpop.xlane.xlu1 %507 }
 0x2e6   : > { %v1472_v19 = vpop.eup %1471 }
 0x2e7   : > { %v857_v20 = vsel %vm471_vm2, %v1472_v19, 0.0  ;;  %v868_v21 = vpack.c.bf16 %v1472_v19, %v1472_v19  ;;  %v1474_v36 = vpop.eup %1473 }
 0x2e8   : > { %858 = vadd.xlane.f32.xlu2 %v857_v20  ;;  %v765_v54 = vmul.f32 %v1474_v36, %v749_v16 }
 0x2e9   : > { %v878_v23 = vunpack.c.l.b16 %v868_v21 }
 0x2ea   : > { %v751_v18 = vpop.f32.mrf.mxu2 }
 0x2eb   : > { %v687_v26 = vpop.xlane.xlu1 %686  ;;  %v882_v27 = vpack.c.b16 %v879_v25, %v878_v23 }
 0x2ed   : > { %1355 = vmatmul.msk.bf16.gmra.mxu0 %vm471_vm2, %v882_v27 }
 0x2f0   : > { %1024 = vadd.xlane.f32.xlu2 %v1023_v22 }
 0x2f2   : > { %v1853_v42 = vpop.f32.mrf.mxu2 }
 0x2f3   : > { %v693_v32 = vpop.xlane.xlu1 %692 }
 0x2f4   : > { %1475 = vrcp.f32 %v693_v32 }
 0x2f5   : > { %1477 = vrcp.f32 %v687_v26 }
 0x2f6   : > { %1479 = vrcp.f32 %v684_v60 }
 0x2f7   : > { %1481 = vrcp.f32 %v853_v51 }
 0x2f8   : > { %1030 = vadd.xlane.f32.xlu2 %v1029_v34  ;;  %1483 = vrcp.f32 %v856_v17 }
 0x2fa   : > { %v1476_v3 = vpop.eup %1475  ;;  %v756_v37 = vpop.f32.mrf.mxu2 }
 0x2fb   : > { %v766_v40 = vmul.f32 %v1476_v3, %v751_v18  ;;  %v1478_v8 = vpop.eup %1477 }
 0x2fc   : > { %v764_v44 = vmul.f32 %v1478_v8, %v746_v10  ;;  %v1480_v46 = vpop.eup %1479  ;;  %v1382_v8 = vld [vmem:[%s1921_s4] sm:$0xff] }
 0x2fd   : > { %1356 = vmatmul.msk.bf16.gmra.mxu0 %vm471_vm2, %v883_v39  ;;  %v1410_v31 = vpack.i.bf16 %v766_v40, %v765_v54  ;;  %v763_v12 = vmul.f32 %v1480_v46, %v744_v6  ;;  %v1482_v29 = vpop.eup %1481 }
 0x2fe   : > { %v1484_v24 = vpop.eup %1483 }
 0x2ff   : > { %1411 = vrot.lane.b32.xlu1 %v1410_v31, %s1523_s18  ;;  %v1400_v52 = vpack.i.bf16 %v764_v44, %v763_v12 }
 0x300   : > { %1033 = vadd.xlane.f32.xlu2 %v1032_v43  ;;  %v1383_v43 = vld [vmem:[%s1921_s4 + $0x8] sm:$0xff] }
 0x301   : > { %1221 = vmatpush.bf16.msra.mxu3 %v1383_v43 }
 0x305   : > { %1222 = vmatpush.bf16.msra.mxu3 %v1382_v8 }
 0x318   : > { %1401 = vrot.lane.b32.xlu2 %v1400_v52, %s1523_s18 }
 0x32d   : > { %v1082_v48 = vpop.f32.mrf.mxu2 }
 0x32e   : > { %v862_v10 = vpop.xlane.xlu0 %861 }
 0x331   : > { %v913_v53 = vpop.f32.mrf.mxu0 }
 0x332   : > { %v932_v38 = vmul.f32 %v1482_v29, %v913_v53 }
 0x335   : > { %v1084_v55 = vpop.f32.mrf.mxu2 }
 0x336   : > { %v865_v41 = vpop.xlane.xlu1 %864  ;;  %v696_v17 = vpop.xlane.xlu0 %695 }
 0x339   : > { %v915_v58 = vpop.f32.mrf.mxu0 }
 0x33a   : > { %v933_v62 = vmul.f32 %v1484_v24, %v915_v58 }
 0x33c   : > { %v1405_v5 = vpack.i.bf16 %v933_v62, %v932_v38 }
 0x33d   : > { %v1087_v0 = vpop.f32.mrf.mxu2 }
 0x33e   : > { %1406 = vrot.lane.b32.xlu0 %v1405_v5, %s1524_s19  ;;  %v1022_v6 = vpop.xlane.xlu1 %1021 }
 0x33f   : > { %1485 = vrcp.f32 %v1022_v6 }
 0x341   : > { %513 = vadd.xlane.f32.xlu2 %v512_v49 }
 0x345   : > { %v1089_v50 = vpop.f32.mrf.mxu2  ;;  %v1486_v13 = vpop.eup %1485 }
 0x346   : > { %v1101_v35 = vmul.f32 %v1486_v13, %v1082_v48  ;;  %v1028_v22 = vpop.xlane.xlu1 %1027 }
 0x34d   : > { %v1092_v56 = vpop.f32.mrf.mxu2 }
 0x355   : > { %v1094_v2 = vpop.f32.mrf.mxu2 }
 0x35b   : > { %v859_v4 = vpop.xlane.xlu2 %858 }
 0x363   : > { %v1025_v7 = vpop.xlane.xlu2 %1024 }
 0x364   : > { %1487 = vrcp.f32 %v1025_v7 }
 0x365   : > { %1489 = vrcp.f32 %v862_v10 }
 0x366   : > { %1491 = vrcp.f32 %v859_v4 }
 0x367   : > { %1493 = vrcp.f32 %v696_v17 }
 0x368   : > { %510 = vadd.xlane.f32.xlu0 %v509_v11  ;;  %1495 = vrcp.f32 %v865_v41 }
 0x36a   : > { %v1488_v60 = vpop.eup %1487  ;;  %v918_v15 = vpop.f32.mrf.mxu0 }
 0x36b   : > { %v1102_v16 = vmul.f32 %v1488_v60, %v1084_v55  ;;  %v1031_v59 = vpop.xlane.xlu2 %1030  ;;  %v1490_v20 = vpop.eup %1489 }
 0x36c   : > { %v1492_v21 = vpop.eup %1491  ;;  %1497 = vrcp.f32 %v1031_v59 }
 0x36d   : > { %v1420_v19 = vpack.i.bf16 %v1102_v16, %v1101_v35  ;;  %v934_v25 = vmul.f32 %v1492_v21, %v918_v15  ;;  %v1494_v27 = vpop.eup %1493 }
 0x36e   : > { %v1496_v1 = vpop.eup %1495  ;;  %v767_v33 = vmul.f32 %v1494_v27, %v1853_v42  ;;  %v515_v42 = vsel %vm484_vm4, %v1739_v45, 0.0 }
 0x371   : > { %v1412_v44 = vpop.permute.xlu1 %1411 }
 0x372   : > { %v920_v23 = vpop.f32.mrf.mxu0  ;;  %v1498_v47 = vpop.eup %1497  ;;  %v1414_v13 = vunpack.i.h.bf16 %v1412_v44  ;;  %v1413_v60 = vunpack.i.l.bf16 %v1412_v44 }
 0x373   : > { %v935_v18 = vmul.f32 %v1490_v20, %v920_v23  ;;  %v1034_v30 = vpop.xlane.xlu2 %1033  ;;  %v1104_v37 = vmul.f32 %v1498_v47, %v1089_v50 }
 0x374   : > { %1499 = vrcp.f32 %v1034_v30 }
 0x375   : > { %v1415_v26 = vpack.i.bf16 %v935_v18, %v934_v25  ;;  %1501 = vrcp.f32 %v1028_v22 }
 0x376   : > { %1503 = vrcp.f32 %v1847_v61 }
 0x377   : > { %1416 = vrot.lane.b32.xlu1 %v1415_v26, %s1524_s19 }
 0x37a   : > { %v923_v32 = vpop.f32.mrf.mxu0  ;;  %v1500_v36 = vpop.eup %1499 }
 0x37b   : > { %v936_v34 = vmul.f32 %v1496_v1, %v923_v32  ;;  %v1502_v3 = vpop.eup %1501  ;;  %v1105_v39 = vmul.f32 %v1500_v36, %v1092_v56  ;;  %v1402_v46 = vpop.permute.xlu2 %1401 }
 0x37c   : > { %1119 = vrot.lane.b32.xlu0 %v767_v33, %s1523_s18  ;;  %v1103_v40 = vmul.f32 %v1502_v3, %v1087_v0  ;;  %v1504_v48 = vpop.eup %1503  ;;  %v1403_v51 = vunpack.i.l.bf16 %v1402_v46  ;;  %v1404_v45 = vunpack.i.h.bf16 %v1402_v46  ;;  %v1430_v33 = vld [vmem:[%s1922_s5] ss:$0 sm:$0xff] }
 0x37d   : > { %1139 = vrot.lane.b32.xlu2 %v936_v34, %s1524_s19  ;;  %v595_v24 = vmul.f32 %v1504_v48, %v1800_v63 }
 0x37e   : > { %v1425_v31 = vpack.i.bf16 %v1104_v37, %v1103_v40  ;;  %v1166_v38 = vsel %vm429_vm1, %v1819_v28, %v1403_v51 }
 0x37f   : > { %1421 = vrot.lane.b32.xlu1 %v1420_v19, %s1525_s20  ;;  %v1167_v61 = vsel %vm429_vm1, %v595_v24, %v1404_v45 }
 0x382   : > { %v925_v54 = vpop.f32.mrf.mxu0 }
 0x384   : > { %1159 = vrot.lane.b32.xlu0 %v1105_v39, %s1525_s20 }
 0x387   : > { %1426 = vrot.lane.b32.xlu1 %v1425_v31, %s1525_s20 }
 0x3b0   : > { %v1407_v12 = vpop.permute.xlu0 %1406 }
 0x3b1   : > { %516 = vadd.xlane.f32.xlu1 %v515_v42  ;;  %v1409_v53 = vunpack.i.h.bf16 %v1407_v12  ;;  %v1408_v55 = vunpack.i.l.bf16 %v1407_v12 }
 0x3b3   : > { %v1173_v49 = vsel %vm1171_vm5, %v1167_v61, %v1409_v53  ;;  %v1172_v50 = vsel %vm1171_vm5, %v1166_v38, %v1408_v55 }
 0x3b4   : > { %v514_v29 = vpop.xlane.xlu2 %513 }
 0x3b5   : > { %1505 = vrcp.f32 %v514_v29 }
 0x3bb   : > { %v1506_v28 = vpop.eup %1505 }
 0x3bc   : > { %v597_v6 = vmul.f32 %v1506_v28, %v1809_v57 }
 0x3be   : > { %v1169_v59 = vsel %vm429_vm1, %v597_v6, %v1414_v13 }
 0x3d7   : > { %v1140_v26 = vpop.permute.xlu2 %1139 }
 0x3db   : > { %v511_v58 = vpop.xlane.xlu0 %510 }
 0x3dc   : > { %1507 = vrcp.f32 %v511_v58 }
 0x3e2   : > { %v1508_v2 = vpop.eup %1507 }
 0x3e3   : > { %v596_v7 = vmul.f32 %v1508_v2, %v1804_v9 }
 0x3e5   : > { %v1168_v16 = vsel %vm429_vm1, %v596_v7, %v1413_v60 }
 0x3e9   : > { %v1417_v52 = vpop.permute.xlu1 %1416 }
 0x3ea   : > { %v1419_v10 = vunpack.i.h.bf16 %v1417_v52  ;;  %v1418_v11 = vunpack.i.l.bf16 %v1417_v52 }
 0x3ec   : > { %v1175_v19 = vsel %vm1171_vm5, %v1169_v59, %v1419_v10  ;;  %v1174_v17 = vsel %vm1171_vm5, %v1168_v16, %v1418_v11 }
 0x3ee   : > { %v1120_v23 = vpop.permute.xlu0 %1119 }
 0x3f1   : > { %v1422_v62 = vpop.permute.xlu1 %1421 }
 0x3f2   : > { %v1424_v5 = vunpack.i.h.bf16 %v1422_v62  ;;  %v1423_v0 = vunpack.i.l.bf16 %v1422_v62 }
 0x3f4   : > { %v1179_v56 = vsel %vm1177_vm6, %v1173_v49, %v1424_v5  ;;  %v1178_v63 = vsel %vm1177_vm6, %v1172_v50, %v1423_v0 }
 0x3f5   : > { %v1183_v41 = vpack.c.bf16 %v1179_v56, %v1178_v63 }
 0x3f6   : > { %v1160_v27 = vpop.permute.xlu0 %1159 }
 0x3f7   : > { %1371 = vmatmul.msk.bf16.vlgmr.msra.gmra.mxu3 %vm277_vm0, %v1183_v41 }
 0x3f9   : > { %v1427_v4 = vpop.permute.xlu1 %1426 }
 0x3fa   : > { %v1429_v15 = vunpack.i.h.bf16 %v1427_v4  ;;  %v1428_v35 = vunpack.i.l.bf16 %v1427_v4 }
 0x3fc   : > { %v1180_v20 = vsel %vm1177_vm6, %v1174_v17, %v1428_v35  ;;  %v1181_v57 = vsel %vm1177_vm6, %v1175_v19, %v1429_v15 }
 0x3fd   : > { %v1184_v9 = vpack.c.bf16 %v1181_v57, %v1180_v20 }
 0x407   : > { %1372 = vmatmul.msk.bf16.gmra.mxu3 %vm277_vm0, %v1184_v9 }
 0x424   : > { %v517_v21 = vpop.xlane.xlu1 %516 }
 0x425   : > { %1509 = vrcp.f32 %v517_v21 }
 0x42b   : > { %v1510_v25 = vpop.eup %1509 }
 0x42c   : > { %v598_v18 = vmul.f32 %v1510_v25, %v1813_v14 }
 0x42e   : > { %v1170_v30 = vsel %vm429_vm1, %v598_v18, %v1120_v23 }
 0x42f   : > { %v1176_v22 = vsel %vm1171_vm5, %v1170_v30, %v1140_v26 }
 0x430   : > { %v1182_v1 = vsel %vm1177_vm6, %v1176_v22, %v1160_v27 }
 0x431   : > { %v1185_v32 = vpack.c.bf16 %v1182_v1, %v1182_v1 }
 0x433   : > { %1373 = vmatmul.msk.bf16.gmra.mxu3 %vm277_vm0, %v1185_v32 }
 0x47a   : > { %v1224_v14 = vpop.f32.mrf.mxu3 }
 0x47b   : > { %v1225_v34 = vadd.f32 %v1430_v33, %v1224_v14 }
 0x47d   : > { %1238 = vst.msk [vmem:[%s251_s8] sm:$0xff] %vm277_vm0, %v1225_v34 }
 0x482   : > { %v1226_v47 = vpop.f32.mrf.mxu3 }
 0x483   : > { %v1227_v36 = vadd.f32 %v1430_v33, %v1226_v47 }
 0x485   : > { %1239 = vst.msk [vmem:[%s251_s8 + $0x8] sm:$0xff] %vm277_vm0, %v1227_v36 }
 0x48a   : > { %v1229_v3 = vpop.f32.mrf.mxu3 }
 0x48b   : > { %v1230_v37 = vadd.f32 %v1430_v33, %v1229_v3 }
 0x48d   : > { %1240 = vst.msk [vmem:[%s251_s8 + $0x10] sm:$0xff] %vm277_vm0, %v1230_v37 }
 0x492   : > { %v1231_v54 = vpop.f32.mrf.mxu3 }
 0x493   : > { %v1232_v39 = vadd.f32 %v1430_v33, %v1231_v54 }
 0x495   : > { %1241 = vst.msk [vmem:[%s251_s8 + $0x18] sm:$0xff] %vm277_vm0, %v1232_v39 }
 0x4b6   : > { %v1234_v40 = vpop.f32.mrf.mxu3 }
 0x4b7   : > { %v1235_v31 = vadd.f32 %v1430_v33, %v1234_v40 }
 0x4b9   : > { %1243 = vst.msk [vmem:[%s251_s8 + $0x20] sm:$0x1] %vm1242_vm7, %v1235_v31 }
 0x4be   : > { %v1236_v42 = vpop.f32.mrf.mxu3 }
 0x4bf PF: > { %s16_s21 = sadd.s32 1, %s1517_s21  }
 0x4c0   : > { %p13_p4 = scmp.ge.s32.totalorder %s16_s21, 4  }
 0x4c2   :  { %15 = sbr.rel (!%p13_p4) target bundleno = 1 (0x1), region = 74 }

</bundles_post_ra>
